<compile_context>
chip_gen: v7x
topology: tpu7x:2x2x1
jax: 0.10.0
libtpu: 0.0.40
codegen_flags: <defaults>
</compile_context>

<pallas_src>
import math
import functools

import jax
import jax.numpy as jnp
from jax.experimental import pallas as pl
from jax.experimental.pallas import tpu as pltpu


# ------------------------------ Fused kernel ------------------------------- #

def _fused_attention_layer_kernel(q_in_ref, k_in_ref, v_in_ref,
                                  wq_ref, bq_ref, wk_ref, bk_ref,
                                  wv_ref, bv_ref, wo_ref, bo_ref,
                                  out_ref, attn_ref, *, n_heads, scale, mix):
    """One grid step == one batch element.

    q_in_ref: (L, d_model)   k_in_ref/v_in_ref: (S, d_model)
    wq/wk: (d_model, H*E)    wv: (d_model, H*D)    wo: (H*D, d_model)
    out_ref: (L, d_model)    attn_ref: (H, L, S)
    """
    H = n_heads
    L = q_in_ref.shape[0]

    # --- Q/K/V projections (lane-dense N = H*E / H*D outputs, MXU) ---
    q = jnp.dot(q_in_ref[...], wq_ref[...],
                preferred_element_type=jnp.float32) + bq_ref[...]
    k = jnp.dot(k_in_ref[...], wk_ref[...],
                preferred_element_type=jnp.float32) + bk_ref[...]
    v = jnp.dot(v_in_ref[...], wv_ref[...],
                preferred_element_type=jnp.float32) + bv_ref[...]

    E = q.shape[-1] // H
    D = v.shape[-1] // H
    d_out = wo_ref.shape[-1]
    wo = wo_ref[...]

    # Accumulate the output projection head-by-head:
    #   out @ wo == sum_h ctx_h @ wo[h*D:(h+1)*D, :]
    final = jnp.zeros((L, d_out), jnp.float32) + bo_ref[...]
    ctx_heads = []

    for h in range(H):                       # static unroll, H is small
        qh = q[:, h * E:(h + 1) * E]         # (L, E)
        kh = k[:, h * E:(h + 1) * E]         # (S, E)
        vh = v[:, h * D:(h + 1) * D]         # (S, D)

        # scores = Q K^T * scale  (contract E, no explicit transpose)
        scores = jax.lax.dot_general(
            qh, kh, (((1,), (1,)), ((), ())),
            preferred_element_type=jnp.float32) * scale

        # numerically-stable softmax over S (f32 on VPU/EUP)
        m = jnp.max(scores, axis=-1, keepdims=True)
        p = jnp.exp(scores - m)
        a = p * pl.reciprocal(jnp.sum(p, axis=-1, keepdims=True), approx=True)

        attn_ref[h, :, :] = a.astype(attn_ref.dtype)

        ctx = jnp.dot(a, vh, preferred_element_type=jnp.float32)     # (L, D)
        if mix:
            ctx_heads.append(ctx)
        else:
            final = final + jnp.dot(ctx, wo[h * D:(h + 1) * D, :],
                                    preferred_element_type=jnp.float32)

    if mix:
        # TODO(synk): mirrors PyTorch `out.transpose(2,1).contiguous().view(B,L,-1)`
        # (a data scramble); kept in-kernel but only traced when mix=True.
        mixed = jnp.concatenate(ctx_heads, axis=0).reshape(L, H * D)
        final = jnp.dot(mixed, wo,
                        preferred_element_type=jnp.float32) + bo_ref[...]

    out_ref[...] = final.astype(out_ref.dtype)


# ------------------------------ Module wrapper ------------------------------ #

def init_attention_layer_params(key, d_model, n_heads,
                                d_keys=None, d_values=None):
    d_keys = d_keys or d_model // n_heads
    d_values = d_values or d_model // n_heads
    ks = jax.random.split(key, 8)

    def lin(kw, kb, fan_in, fan_out):
        bound = 1.0 / math.sqrt(fan_in)
        w = jax.random.uniform(kw, (fan_in, fan_out), jnp.float32, -bound, bound)
        b = jax.random.uniform(kb, (1, fan_out), jnp.float32, -bound, bound)
        return w, b

    wq, bq = lin(ks[0], ks[1], d_model, d_keys * n_heads)
    wk, bk = lin(ks[2], ks[3], d_model, d_keys * n_heads)
    wv, bv = lin(ks[4], ks[5], d_model, d_values * n_heads)
    wo, bo = lin(ks[6], ks[7], d_values * n_heads, d_model)
    return dict(wq=wq, bq=bq, wk=wk, bk=bk, wv=wv, bv=bv, wo=wo, bo=bo)


def attention_layer_forward(params, queries, keys, values, *, n_heads, mix=False):
    B, L, d_model = queries.shape
    _, S, _ = keys.shape
    H = n_heads

    HE = params["wq"].shape[1]          # H * d_keys
    HD = params["wv"].shape[1]          # H * d_values
    d_out = params["wo"].shape[1]
    E = HE // H
    scale = 1.0 / math.sqrt(E)

    kernel = functools.partial(_fused_attention_layer_kernel,
                               n_heads=H, scale=scale, mix=mix)

    out, attn = pl.pallas_call(
        kernel,
        out_shape=(jax.ShapeDtypeStruct((B, L, d_out), queries.dtype),
                   jax.ShapeDtypeStruct((B, H, L, S), jnp.float32)),
        grid=(B,),
        in_specs=[
            pl.BlockSpec((pl.Squeezed(), L, d_model), lambda b: (b, 0, 0)),
            pl.BlockSpec((pl.Squeezed(), S, d_model), lambda b: (b, 0, 0)),
            pl.BlockSpec((pl.Squeezed(), S, d_model), lambda b: (b, 0, 0)),
            pl.BlockSpec((d_model, HE), lambda b: (0, 0)),
            pl.BlockSpec((1, HE), lambda b: (0, 0)),
            pl.BlockSpec((d_model, HE), lambda b: (0, 0)),
            pl.BlockSpec((1, HE), lambda b: (0, 0)),
            pl.BlockSpec((d_model, HD), lambda b: (0, 0)),
            pl.BlockSpec((1, HD), lambda b: (0, 0)),
            pl.BlockSpec((HD, d_out), lambda b: (0, 0)),
            pl.BlockSpec((1, d_out), lambda b: (0, 0)),
        ],
        out_specs=(
            pl.BlockSpec((pl.Squeezed(), L, d_out), lambda b: (b, 0, 0)),
            pl.BlockSpec((pl.Squeezed(), H, L, S), lambda b: (b, 0, 0, 0)),
        ),
        compiler_params=pltpu.CompilerParams(
            dimension_semantics=("parallel",)),
    )(queries, keys, values,
      params["wq"], params["bq"], params["wk"], params["bk"],
      params["wv"], params["bv"], params["wo"], params["bo"])

    return out, attn


# -------------------------------- Reference --------------------------------- #

def _reference_forward(params, queries, keys, values, n_heads, mix=False):
    B, L, d_model = queries.shape
    _, S, _ = keys.shape
    H = n_heads
    q = (queries @ params["wq"] + params["bq"]).reshape(B, L, H, -1)
    k = (keys @ params["wk"] + params["bk"]).reshape(B, S, H, -1)
    v = (values @ params["wv"] + params["bv"]).reshape(B, S, H, -1)
    E = q.shape[-1]
    scores = jnp.einsum("blhe,bshe->bhls", q, k) / math.sqrt(E)
    attn = jax.nn.softmax(scores, axis=-1)
    out = jnp.einsum("bhls,bshd->blhd", attn, v)
    if mix:
        out = jnp.transpose(out, (0, 2, 1, 3))
    out = out.reshape(B, L, -1)
    return out @ params["wo"] + params["bo"], attn


# ----------------------------------- Main ------------------------------------ #

if __name__ == "__main__":
    B, L, S = 2, 8, 8
    d_model, n_heads = 32, 4

    key = jax.random.PRNGKey(0)
    kp, kq, kk, kv = jax.random.split(key, 4)

    params = init_attention_layer_params(kp, d_model, n_heads)
    queries = jax.random.normal(kq, (B, L, d_model), jnp.float32)
    keys = jax.random.normal(kk, (B, S, d_model), jnp.float32)
    values = jax.random.normal(kv, (B, S, d_model), jnp.float32)

    fwd = jax.jit(functools.partial(attention_layer_forward, n_heads=n_heads))
    out, attn = fwd(params, queries, keys, values)
    out = jax.block_until_ready(out)
    attn = jax.block_until_ready(attn)

    ref_out, ref_attn = _reference_forward(params, queries, keys, values, n_heads)

    assert out.shape == (B, L, d_model)
    assert attn.shape == (B, n_heads, L, S)
    # Tolerances widened slightly vs an exact-divide softmax because the kernel
    # uses the EUP approximate reciprocal (pl.reciprocal(approx=True)).
    assert jnp.allclose(attn, ref_attn, atol=1e-3, rtol=1e-3), "attn mismatch"
    assert jnp.allclose(out, ref_out, atol=2e-3, rtol=2e-3), "output mismatch"

    print("KERNEL_OK")
</pallas_src>

<mosaic_0001>
module attributes {stable_mosaic.version = 11 : i64} {
  func.func @_fused_attention_layer_kernel(%arg0: i32, %arg1: memref<1x8x32xf32, #tpu.memory_space<vmem>>, %arg2: memref<1x8x32xf32, #tpu.memory_space<vmem>>, %arg3: memref<1x8x32xf32, #tpu.memory_space<vmem>>, %arg4: memref<32x32xf32, #tpu.memory_space<vmem>>, %arg5: memref<1x32xf32, #tpu.memory_space<vmem>>, %arg6: memref<32x32xf32, #tpu.memory_space<vmem>>, %arg7: memref<1x32xf32, #tpu.memory_space<vmem>>, %arg8: memref<32x32xf32, #tpu.memory_space<vmem>>, %arg9: memref<1x32xf32, #tpu.memory_space<vmem>>, %arg10: memref<32x32xf32, #tpu.memory_space<vmem>>, %arg11: memref<1x32xf32, #tpu.memory_space<vmem>>, %arg12: memref<1x8x32xf32, #tpu.memory_space<vmem>>, %arg13: memref<1x4x8x8xf32, #tpu.memory_space<vmem>>) attributes {dimension_semantics = [#tpu.dimension_semantics<parallel>], iteration_bounds = array<i64: 2>, scalar_prefetch = 0 : i64, scratch_operands = 0 : i64, tpu.core_type = #tpu.core_type<tc>, window_params = [{transform_indices = @transform_0, window_bounds = array<i64: 1, 8, 32>}, {transform_indices = @transform_1, window_bounds = array<i64: 1, 8, 32>}, {transform_indices = @transform_2, window_bounds = array<i64: 1, 8, 32>}, {pipeline_mode = #tpu.pipeline_mode<synchronous>, transform_indices = @transform_3, window_bounds = array<i64: 32, 32>}, {pipeline_mode = #tpu.pipeline_mode<synchronous>, transform_indices = @transform_4, window_bounds = array<i64: 1, 32>}, {pipeline_mode = #tpu.pipeline_mode<synchronous>, transform_indices = @transform_5, window_bounds = array<i64: 32, 32>}, {pipeline_mode = #tpu.pipeline_mode<synchronous>, transform_indices = @transform_6, window_bounds = array<i64: 1, 32>}, {pipeline_mode = #tpu.pipeline_mode<synchronous>, transform_indices = @transform_7, window_bounds = array<i64: 32, 32>}, {pipeline_mode = #tpu.pipeline_mode<synchronous>, transform_indices = @transform_8, window_bounds = array<i64: 1, 32>}, {pipeline_mode = #tpu.pipeline_mode<synchronous>, transform_indices = @transform_9, window_bounds = array<i64: 32, 32>}, {pipeline_mode = #tpu.pipeline_mode<synchronous>, transform_indices = @transform_10, window_bounds = array<i64: 1, 32>}, {transform_indices = @transform_11, window_bounds = array<i64: 1, 8, 32>}, {transform_indices = @transform_12, window_bounds = array<i64: 1, 4, 8, 8>}]} {
    %c0 = arith.constant 0 : index
    %c0_0 = arith.constant 0 : index
    %c0_1 = arith.constant 0 : index
    %0 = vector.load %arg1[%c0, %c0_0, %c0_1] : memref<1x8x32xf32, #tpu.memory_space<vmem>>, vector<1x8x32xf32>
    %1 = vector.shape_cast %0 : vector<1x8x32xf32> to vector<8x32xf32>
    %c0_2 = arith.constant 0 : index
    %c0_3 = arith.constant 0 : index
    %2 = vector.load %arg4[%c0_2, %c0_3] : memref<32x32xf32, #tpu.memory_space<vmem>>, vector<32x32xf32>
    %cst = arith.constant dense<0.000000e+00> : vector<8x32xf32>
    %3 = tpu.matmul %1, %2, %cst {dimension_numbers = #tpu.dot_dimension_numbers<[1], [0], [0], [1], [0, 0, 1, 1], [], []>} : vector<8x32xf32>, vector<32x32xf32>, vector<8x32xf32> -> vector<8x32xf32>
    %c0_4 = arith.constant 0 : index
    %c0_5 = arith.constant 0 : index
    %4 = vector.load %arg5[%c0_4, %c0_5] : memref<1x32xf32, #tpu.memory_space<vmem>>, vector<1x32xf32>
    %5 = vector.broadcast %4 : vector<1x32xf32> to vector<8x32xf32>
    %6 = arith.addf %3, %5 : vector<8x32xf32>
    %c0_6 = arith.constant 0 : index
    %c0_7 = arith.constant 0 : index
    %c0_8 = arith.constant 0 : index
    %7 = vector.load %arg2[%c0_6, %c0_7, %c0_8] : memref<1x8x32xf32, #tpu.memory_space<vmem>>, vector<1x8x32xf32>
    %8 = vector.shape_cast %7 : vector<1x8x32xf32> to vector<8x32xf32>
    %c0_9 = arith.constant 0 : index
    %c0_10 = arith.constant 0 : index
    %9 = vector.load %arg6[%c0_9, %c0_10] : memref<32x32xf32, #tpu.memory_space<vmem>>, vector<32x32xf32>
    %cst_11 = arith.constant dense<0.000000e+00> : vector<8x32xf32>
    %10 = tpu.matmul %8, %9, %cst_11 {dimension_numbers = #tpu.dot_dimension_numbers<[1], [0], [0], [1], [0, 0, 1, 1], [], []>} : vector<8x32xf32>, vector<32x32xf32>, vector<8x32xf32> -> vector<8x32xf32>
    %c0_12 = arith.constant 0 : index
    %c0_13 = arith.constant 0 : index
    %11 = vector.load %arg7[%c0_12, %c0_13] : memref<1x32xf32, #tpu.memory_space<vmem>>, vector<1x32xf32>
    %12 = vector.broadcast %11 : vector<1x32xf32> to vector<8x32xf32>
    %13 = arith.addf %10, %12 : vector<8x32xf32>
    %c0_14 = arith.constant 0 : index
    %c0_15 = arith.constant 0 : index
    %c0_16 = arith.constant 0 : index
    %14 = vector.load %arg3[%c0_14, %c0_15, %c0_16] : memref<1x8x32xf32, #tpu.memory_space<vmem>>, vector<1x8x32xf32>
    %15 = vector.shape_cast %14 : vector<1x8x32xf32> to vector<8x32xf32>
    %c0_17 = arith.constant 0 : index
    %c0_18 = arith.constant 0 : index
    %16 = vector.load %arg8[%c0_17, %c0_18] : memref<32x32xf32, #tpu.memory_space<vmem>>, vector<32x32xf32>
    %cst_19 = arith.constant dense<0.000000e+00> : vector<8x32xf32>
    %17 = tpu.matmul %15, %16, %cst_19 {dimension_numbers = #tpu.dot_dimension_numbers<[1], [0], [0], [1], [0, 0, 1, 1], [], []>} : vector<8x32xf32>, vector<32x32xf32>, vector<8x32xf32> -> vector<8x32xf32>
    %c0_20 = arith.constant 0 : index
    %c0_21 = arith.constant 0 : index
    %18 = vector.load %arg9[%c0_20, %c0_21] : memref<1x32xf32, #tpu.memory_space<vmem>>, vector<1x32xf32>
    %19 = vector.broadcast %18 : vector<1x32xf32> to vector<8x32xf32>
    %20 = arith.addf %17, %19 : vector<8x32xf32>
    %c0_22 = arith.constant 0 : index
    %c0_23 = arith.constant 0 : index
    %21 = vector.load %arg10[%c0_22, %c0_23] : memref<32x32xf32, #tpu.memory_space<vmem>>, vector<32x32xf32>
    %cst_24 = arith.constant 0.000000e+00 : f32
    %22 = vector.broadcast %cst_24 : f32 to vector<8x32xf32>
    %c0_25 = arith.constant 0 : index
    %c0_26 = arith.constant 0 : index
    %23 = vector.load %arg11[%c0_25, %c0_26] : memref<1x32xf32, #tpu.memory_space<vmem>>, vector<1x32xf32>
    %24 = vector.broadcast %23 : vector<1x32xf32> to vector<8x32xf32>
    %25 = arith.addf %22, %24 : vector<8x32xf32>
    %26 = vector.extract_strided_slice %6 {offsets = [0, 0], sizes = [8, 8], strides = [1, 1]} : vector<8x32xf32> to vector<8x8xf32>
    %27 = vector.extract_strided_slice %13 {offsets = [0, 0], sizes = [8, 8], strides = [1, 1]} : vector<8x32xf32> to vector<8x8xf32>
    %28 = vector.extract_strided_slice %20 {offsets = [0, 0], sizes = [8, 8], strides = [1, 1]} : vector<8x32xf32> to vector<8x8xf32>
    %cst_27 = arith.constant dense<0.000000e+00> : vector<8x8xf32>
    %29 = tpu.matmul %26, %27, %cst_27 {dimension_numbers = #tpu.dot_dimension_numbers<[1], [1], [0], [0], [0, 0, 1, 0], [], []>} : vector<8x8xf32>, vector<8x8xf32>, vector<8x8xf32> -> vector<8x8xf32>
    %cst_28 = arith.constant 0.353553385 : f32
    %30 = vector.broadcast %cst_28 : f32 to vector<8x8xf32>
    %31 = arith.mulf %29, %30 : vector<8x8xf32>
    %cst_29 = arith.constant dense<0xFF800000> : vector<8xf32>
    %32 = vector.multi_reduction <maximumf>, %31, %cst_29 [1] : vector<8x8xf32> to vector<8xf32>
    %33 = vector.shape_cast %32 : vector<8xf32> to vector<8x1xf32>
    %34 = vector.broadcast %33 : vector<8x1xf32> to vector<8x8xf32>
    %35 = arith.subf %31, %34 : vector<8x8xf32>
    %36 = math.exp %35 : vector<8x8xf32>
    %cst_30 = arith.constant dense<0.000000e+00> : vector<8xf32>
    %37 = vector.multi_reduction <add>, %36, %cst_30 [1] : vector<8x8xf32> to vector<8xf32>
    %38 = vector.shape_cast %37 : vector<8xf32> to vector<8x1xf32>
    %39 = tpu.reciprocal %38 {approx = true} : vector<8x1xf32> -> vector<8x1xf32>
    %40 = vector.broadcast %39 : vector<8x1xf32> to vector<8x8xf32>
    %41 = arith.mulf %36, %40 : vector<8x8xf32>
    %c0_31 = arith.constant 0 : index
    %c0_32 = arith.constant 0 : index
    %c0_33 = arith.constant 0 : index
    %c0_34 = arith.constant 0 : index
    %42 = vector.load %arg13[%c0_31, %c0_32, %c0_33, %c0_34] : memref<1x4x8x8xf32, #tpu.memory_space<vmem>>, vector<1x1x8x8xf32>
    %43 = vector.shape_cast %42 : vector<1x1x8x8xf32> to vector<8x8xf32>
    %44 = vector.shape_cast %41 : vector<8x8xf32> to vector<1x1x8x8xf32>
    tpu.vector_store %arg13[%c0_31, %c0_32, %c0_33, %c0_34], %44 {strides = array<i32>} : memref<1x4x8x8xf32, #tpu.memory_space<vmem>>, vector<1x1x8x8xf32>,
    %cst_35 = arith.constant dense<0.000000e+00> : vector<8x8xf32>
    %45 = tpu.matmul %41, %28, %cst_35 {dimension_numbers = #tpu.dot_dimension_numbers<[1], [0], [0], [1], [0, 0, 1, 1], [], []>} : vector<8x8xf32>, vector<8x8xf32>, vector<8x8xf32> -> vector<8x8xf32>
    %46 = vector.extract_strided_slice %21 {offsets = [0, 0], sizes = [8, 32], strides = [1, 1]} : vector<32x32xf32> to vector<8x32xf32>
    %cst_36 = arith.constant dense<0.000000e+00> : vector<8x32xf32>
    %47 = tpu.matmul %45, %46, %cst_36 {dimension_numbers = #tpu.dot_dimension_numbers<[1], [0], [0], [1], [0, 0, 1, 1], [], []>} : vector<8x8xf32>, vector<8x32xf32>, vector<8x32xf32> -> vector<8x32xf32>
    %48 = arith.addf %25, %47 : vector<8x32xf32>
    %49 = vector.extract_strided_slice %6 {offsets = [0, 8], sizes = [8, 8], strides = [1, 1]} : vector<8x32xf32> to vector<8x8xf32>
    %50 = vector.extract_strided_slice %13 {offsets = [0, 8], sizes = [8, 8], strides = [1, 1]} : vector<8x32xf32> to vector<8x8xf32>
    %51 = vector.extract_strided_slice %20 {offsets = [0, 8], sizes = [8, 8], strides = [1, 1]} : vector<8x32xf32> to vector<8x8xf32>
    %cst_37 = arith.constant dense<0.000000e+00> : vector<8x8xf32>
    %52 = tpu.matmul %49, %50, %cst_37 {dimension_numbers = #tpu.dot_dimension_numbers<[1], [1], [0], [0], [0, 0, 1, 0], [], []>} : vector<8x8xf32>, vector<8x8xf32>, vector<8x8xf32> -> vector<8x8xf32>
    %cst_38 = arith.constant 0.353553385 : f32
    %53 = vector.broadcast %cst_38 : f32 to vector<8x8xf32>
    %54 = arith.mulf %52, %53 : vector<8x8xf32>
    %cst_39 = arith.constant dense<0xFF800000> : vector<8xf32>
    %55 = vector.multi_reduction <maximumf>, %54, %cst_39 [1] : vector<8x8xf32> to vector<8xf32>
    %56 = vector.shape_cast %55 : vector<8xf32> to vector<8x1xf32>
    %57 = vector.broadcast %56 : vector<8x1xf32> to vector<8x8xf32>
    %58 = arith.subf %54, %57 : vector<8x8xf32>
    %59 = math.exp %58 : vector<8x8xf32>
    %cst_40 = arith.constant dense<0.000000e+00> : vector<8xf32>
    %60 = vector.multi_reduction <add>, %59, %cst_40 [1] : vector<8x8xf32> to vector<8xf32>
    %61 = vector.shape_cast %60 : vector<8xf32> to vector<8x1xf32>
    %62 = tpu.reciprocal %61 {approx = true} : vector<8x1xf32> -> vector<8x1xf32>
    %63 = vector.broadcast %62 : vector<8x1xf32> to vector<8x8xf32>
    %64 = arith.mulf %59, %63 : vector<8x8xf32>
    %c0_41 = arith.constant 0 : index
    %c1 = arith.constant 1 : index
    %c0_42 = arith.constant 0 : index
    %c0_43 = arith.constant 0 : index
    %65 = vector.load %arg13[%c0_41, %c1, %c0_42, %c0_43] : memref<1x4x8x8xf32, #tpu.memory_space<vmem>>, vector<1x1x8x8xf32>
    %66 = vector.shape_cast %65 : vector<1x1x8x8xf32> to vector<8x8xf32>
    %67 = vector.shape_cast %64 : vector<8x8xf32> to vector<1x1x8x8xf32>
    tpu.vector_store %arg13[%c0_41, %c1, %c0_42, %c0_43], %67 {strides = array<i32>} : memref<1x4x8x8xf32, #tpu.memory_space<vmem>>, vector<1x1x8x8xf32>,
    %cst_44 = arith.constant dense<0.000000e+00> : vector<8x8xf32>
    %68 = tpu.matmul %64, %51, %cst_44 {dimension_numbers = #tpu.dot_dimension_numbers<[1], [0], [0], [1], [0, 0, 1, 1], [], []>} : vector<8x8xf32>, vector<8x8xf32>, vector<8x8xf32> -> vector<8x8xf32>
    %69 = vector.extract_strided_slice %21 {offsets = [8, 0], sizes = [8, 32], strides = [1, 1]} : vector<32x32xf32> to vector<8x32xf32>
    %cst_45 = arith.constant dense<0.000000e+00> : vector<8x32xf32>
    %70 = tpu.matmul %68, %69, %cst_45 {dimension_numbers = #tpu.dot_dimension_numbers<[1], [0], [0], [1], [0, 0, 1, 1], [], []>} : vector<8x8xf32>, vector<8x32xf32>, vector<8x32xf32> -> vector<8x32xf32>
    %71 = arith.addf %48, %70 : vector<8x32xf32>
    %72 = vector.extract_strided_slice %6 {offsets = [0, 16], sizes = [8, 8], strides = [1, 1]} : vector<8x32xf32> to vector<8x8xf32>
    %73 = vector.extract_strided_slice %13 {offsets = [0, 16], sizes = [8, 8], strides = [1, 1]} : vector<8x32xf32> to vector<8x8xf32>
    %74 = vector.extract_strided_slice %20 {offsets = [0, 16], sizes = [8, 8], strides = [1, 1]} : vector<8x32xf32> to vector<8x8xf32>
    %cst_46 = arith.constant dense<0.000000e+00> : vector<8x8xf32>
    %75 = tpu.matmul %72, %73, %cst_46 {dimension_numbers = #tpu.dot_dimension_numbers<[1], [1], [0], [0], [0, 0, 1, 0], [], []>} : vector<8x8xf32>, vector<8x8xf32>, vector<8x8xf32> -> vector<8x8xf32>
    %cst_47 = arith.constant 0.353553385 : f32
    %76 = vector.broadcast %cst_47 : f32 to vector<8x8xf32>
    %77 = arith.mulf %75, %76 : vector<8x8xf32>
    %cst_48 = arith.constant dense<0xFF800000> : vector<8xf32>
    %78 = vector.multi_reduction <maximumf>, %77, %cst_48 [1] : vector<8x8xf32> to vector<8xf32>
    %79 = vector.shape_cast %78 : vector<8xf32> to vector<8x1xf32>
    %80 = vector.broadcast %79 : vector<8x1xf32> to vector<8x8xf32>
    %81 = arith.subf %77, %80 : vector<8x8xf32>
    %82 = math.exp %81 : vector<8x8xf32>
    %cst_49 = arith.constant dense<0.000000e+00> : vector<8xf32>
    %83 = vector.multi_reduction <add>, %82, %cst_49 [1] : vector<8x8xf32> to vector<8xf32>
    %84 = vector.shape_cast %83 : vector<8xf32> to vector<8x1xf32>
    %85 = tpu.reciprocal %84 {approx = true} : vector<8x1xf32> -> vector<8x1xf32>
    %86 = vector.broadcast %85 : vector<8x1xf32> to vector<8x8xf32>
    %87 = arith.mulf %82, %86 : vector<8x8xf32>
    %c0_50 = arith.constant 0 : index
    %c2 = arith.constant 2 : index
    %c0_51 = arith.constant 0 : index
    %c0_52 = arith.constant 0 : index
    %88 = vector.load %arg13[%c0_50, %c2, %c0_51, %c0_52] : memref<1x4x8x8xf32, #tpu.memory_space<vmem>>, vector<1x1x8x8xf32>
    %89 = vector.shape_cast %88 : vector<1x1x8x8xf32> to vector<8x8xf32>
    %90 = vector.shape_cast %87 : vector<8x8xf32> to vector<1x1x8x8xf32>
    tpu.vector_store %arg13[%c0_50, %c2, %c0_51, %c0_52], %90 {strides = array<i32>} : memref<1x4x8x8xf32, #tpu.memory_space<vmem>>, vector<1x1x8x8xf32>,
    %cst_53 = arith.constant dense<0.000000e+00> : vector<8x8xf32>
    %91 = tpu.matmul %87, %74, %cst_53 {dimension_numbers = #tpu.dot_dimension_numbers<[1], [0], [0], [1], [0, 0, 1, 1], [], []>} : vector<8x8xf32>, vector<8x8xf32>, vector<8x8xf32> -> vector<8x8xf32>
    %92 = vector.extract_strided_slice %21 {offsets = [16, 0], sizes = [8, 32], strides = [1, 1]} : vector<32x32xf32> to vector<8x32xf32>
    %cst_54 = arith.constant dense<0.000000e+00> : vector<8x32xf32>
    %93 = tpu.matmul %91, %92, %cst_54 {dimension_numbers = #tpu.dot_dimension_numbers<[1], [0], [0], [1], [0, 0, 1, 1], [], []>} : vector<8x8xf32>, vector<8x32xf32>, vector<8x32xf32> -> vector<8x32xf32>
    %94 = arith.addf %71, %93 : vector<8x32xf32>
    %95 = vector.extract_strided_slice %6 {offsets = [0, 24], sizes = [8, 8], strides = [1, 1]} : vector<8x32xf32> to vector<8x8xf32>
    %96 = vector.extract_strided_slice %13 {offsets = [0, 24], sizes = [8, 8], strides = [1, 1]} : vector<8x32xf32> to vector<8x8xf32>
    %97 = vector.extract_strided_slice %20 {offsets = [0, 24], sizes = [8, 8], strides = [1, 1]} : vector<8x32xf32> to vector<8x8xf32>
    %cst_55 = arith.constant dense<0.000000e+00> : vector<8x8xf32>
    %98 = tpu.matmul %95, %96, %cst_55 {dimension_numbers = #tpu.dot_dimension_numbers<[1], [1], [0], [0], [0, 0, 1, 0], [], []>} : vector<8x8xf32>, vector<8x8xf32>, vector<8x8xf32> -> vector<8x8xf32>
    %cst_56 = arith.constant 0.353553385 : f32
    %99 = vector.broadcast %cst_56 : f32 to vector<8x8xf32>
    %100 = arith.mulf %98, %99 : vector<8x8xf32>
    %cst_57 = arith.constant dense<0xFF800000> : vector<8xf32>
    %101 = vector.multi_reduction <maximumf>, %100, %cst_57 [1] : vector<8x8xf32> to vector<8xf32>
    %102 = vector.shape_cast %101 : vector<8xf32> to vector<8x1xf32>
    %103 = vector.broadcast %102 : vector<8x1xf32> to vector<8x8xf32>
    %104 = arith.subf %100, %103 : vector<8x8xf32>
    %105 = math.exp %104 : vector<8x8xf32>
    %cst_58 = arith.constant dense<0.000000e+00> : vector<8xf32>
    %106 = vector.multi_reduction <add>, %105, %cst_58 [1] : vector<8x8xf32> to vector<8xf32>
    %107 = vector.shape_cast %106 : vector<8xf32> to vector<8x1xf32>
    %108 = tpu.reciprocal %107 {approx = true} : vector<8x1xf32> -> vector<8x1xf32>
    %109 = vector.broadcast %108 : vector<8x1xf32> to vector<8x8xf32>
    %110 = arith.mulf %105, %109 : vector<8x8xf32>
    %c0_59 = arith.constant 0 : index
    %c3 = arith.constant 3 : index
    %c0_60 = arith.constant 0 : index
    %c0_61 = arith.constant 0 : index
    %111 = vector.load %arg13[%c0_59, %c3, %c0_60, %c0_61] : memref<1x4x8x8xf32, #tpu.memory_space<vmem>>, vector<1x1x8x8xf32>
    %112 = vector.shape_cast %111 : vector<1x1x8x8xf32> to vector<8x8xf32>
    %113 = vector.shape_cast %110 : vector<8x8xf32> to vector<1x1x8x8xf32>
    tpu.vector_store %arg13[%c0_59, %c3, %c0_60, %c0_61], %113 {strides = array<i32>} : memref<1x4x8x8xf32, #tpu.memory_space<vmem>>, vector<1x1x8x8xf32>,
    %cst_62 = arith.constant dense<0.000000e+00> : vector<8x8xf32>
    %114 = tpu.matmul %110, %97, %cst_62 {dimension_numbers = #tpu.dot_dimension_numbers<[1], [0], [0], [1], [0, 0, 1, 1], [], []>} : vector<8x8xf32>, vector<8x8xf32>, vector<8x8xf32> -> vector<8x8xf32>
    %115 = vector.extract_strided_slice %21 {offsets = [24, 0], sizes = [8, 32], strides = [1, 1]} : vector<32x32xf32> to vector<8x32xf32>
    %cst_63 = arith.constant dense<0.000000e+00> : vector<8x32xf32>
    %116 = tpu.matmul %114, %115, %cst_63 {dimension_numbers = #tpu.dot_dimension_numbers<[1], [0], [0], [1], [0, 0, 1, 1], [], []>} : vector<8x8xf32>, vector<8x32xf32>, vector<8x32xf32> -> vector<8x32xf32>
    %117 = arith.addf %94, %116 : vector<8x32xf32>
    %c0_64 = arith.constant 0 : index
    %c0_65 = arith.constant 0 : index
    %c0_66 = arith.constant 0 : index
    %118 = vector.load %arg12[%c0_64, %c0_65, %c0_66] : memref<1x8x32xf32, #tpu.memory_space<vmem>>, vector<1x8x32xf32>
    %119 = vector.shape_cast %118 : vector<1x8x32xf32> to vector<8x32xf32>
    %120 = vector.shape_cast %117 : vector<8x32xf32> to vector<1x8x32xf32>
    tpu.vector_store %arg12[%c0_64, %c0_65, %c0_66], %120 {strides = array<i32>} : memref<1x8x32xf32, #tpu.memory_space<vmem>>, vector<1x8x32xf32>,
    return
  }
  func.func @transform_0(%arg0: i32) -> (i32, i32, i32) {
    %c0_i32 = arith.constant 0 : i32
    %c0_i32_0 = arith.constant 0 : i32
    %c0_i32_1 = arith.constant 0 : i32
    return %arg0, %c0_i32, %c0_i32_0 : i32, i32, i32
  }
  func.func @transform_1(%arg0: i32) -> (i32, i32, i32) {
    %c0_i32 = arith.constant 0 : i32
    %c0_i32_0 = arith.constant 0 : i32
    %c0_i32_1 = arith.constant 0 : i32
    return %arg0, %c0_i32, %c0_i32_0 : i32, i32, i32
  }
  func.func @transform_2(%arg0: i32) -> (i32, i32, i32) {
    %c0_i32 = arith.constant 0 : i32
    %c0_i32_0 = arith.constant 0 : i32
    %c0_i32_1 = arith.constant 0 : i32
    return %arg0, %c0_i32, %c0_i32_0 : i32, i32, i32
  }
  func.func @transform_3(%arg0: i32) -> (i32, i32) {
    %c0_i32 = arith.constant 0 : i32
    %c0_i32_0 = arith.constant 0 : i32
    %c0_i32_1 = arith.constant 0 : i32
    return %c0_i32, %c0_i32_0 : i32, i32
  }
  func.func @transform_4(%arg0: i32) -> (i32, i32) {
    %c0_i32 = arith.constant 0 : i32
    %c0_i32_0 = arith.constant 0 : i32
    %c0_i32_1 = arith.constant 0 : i32
    return %c0_i32, %c0_i32_0 : i32, i32
  }
  func.func @transform_5(%arg0: i32) -> (i32, i32) {
    %c0_i32 = arith.constant 0 : i32
    %c0_i32_0 = arith.constant 0 : i32
    %c0_i32_1 = arith.constant 0 : i32
    return %c0_i32, %c0_i32_0 : i32, i32
  }
  func.func @transform_6(%arg0: i32) -> (i32, i32) {
    %c0_i32 = arith.constant 0 : i32
    %c0_i32_0 = arith.constant 0 : i32
    %c0_i32_1 = arith.constant 0 : i32
    return %c0_i32, %c0_i32_0 : i32, i32
  }
  func.func @transform_7(%arg0: i32) -> (i32, i32) {
    %c0_i32 = arith.constant 0 : i32
    %c0_i32_0 = arith.constant 0 : i32
    %c0_i32_1 = arith.constant 0 : i32
    return %c0_i32, %c0_i32_0 : i32, i32
  }
  func.func @transform_8(%arg0: i32) -> (i32, i32) {
    %c0_i32 = arith.constant 0 : i32
    %c0_i32_0 = arith.constant 0 : i32
    %c0_i32_1 = arith.constant 0 : i32
    return %c0_i32, %c0_i32_0 : i32, i32
  }
  func.func @transform_9(%arg0: i32) -> (i32, i32) {
    %c0_i32 = arith.constant 0 : i32
    %c0_i32_0 = arith.constant 0 : i32
    %c0_i32_1 = arith.constant 0 : i32
    return %c0_i32, %c0_i32_0 : i32, i32
  }
  func.func @transform_10(%arg0: i32) -> (i32, i32) {
    %c0_i32 = arith.constant 0 : i32
    %c0_i32_0 = arith.constant 0 : i32
    %c0_i32_1 = arith.constant 0 : i32
    return %c0_i32, %c0_i32_0 : i32, i32
  }
  func.func @transform_11(%arg0: i32) -> (i32, i32, i32) {
    %c0_i32 = arith.constant 0 : i32
    %c0_i32_0 = arith.constant 0 : i32
    %c0_i32_1 = arith.constant 0 : i32
    return %arg0, %c0_i32, %c0_i32_0 : i32, i32, i32
  }
  func.func @transform_12(%arg0: i32) -> (i32, i32, i32, i32) {
    %c0_i32 = arith.constant 0 : i32
    %c0_i32_0 = arith.constant 0 : i32
    %c0_i32_1 = arith.constant 0 : i32
    %c0_i32_2 = arith.constant 0 : i32
    return %arg0, %c0_i32, %c0_i32_0, %c0_i32_1 : i32, i32, i32, i32
  }
}

</mosaic_0001>

<bundles_post_ra>
// kernel: attention_layer_forward.1
= control target key start
LH: loop header
LB: loop body
LE: loop exit
PB: predicated region body
PF: predicated region fallthrough
CT: control target
= control target key end

     0   :  { %s3257_s0 = inlined_call_operand.vmem [shape: f32[2,8,32], index: 0, kind: input, shape index: {}]   ;;  %s3258_s1 = inlined_call_operand.vmem [shape: f32[2,8,32], index: 1, kind: input, shape index: {}]   ;;  %s3259_s2 = inlined_call_operand.hbm [shape: f32[2,8,32], index: 2, kind: input, shape index: {}]   ;;  %s3260_s3 = inlined_call_operand.hbm [shape: f32[32,32], index: 3, kind: input, shape index: {}]   ;;  %s3261_s4 = inlined_call_operand.vmem [shape: f32[1,32], index: 4, kind: input, shape index: {}]   ;;  %s3262_s5 = inlined_call_operand.hbm [shape: f32[32,32], index: 5, kind: input, shape index: {}]   ;;  %s3263_s6 = inlined_call_operand.hbm [shape: f32[1,32], index: 6, kind: input, shape index: {}]   ;;  %s3264_s7 = inlined_call_operand.hbm [shape: f32[32,32], index: 7, kind: input, shape index: {}]   ;;  %s3265_s8 = inlined_call_operand.vmem [shape: f32[1,32], index: 8, kind: input, shape index: {}]   ;;  %s3266_s9 = inlined_call_operand.hbm [shape: f32[32,32], index: 9, kind: input, shape index: {}]   ;;  %s3267_s10 = inlined_call_operand.hbm [shape: f32[1,32], index: 10, kind: input, shape index: {}]   ;;  %s3268_s11 = inlined_call_operand.hbm [shape: f32[2,8,32], index: 11, kind: output, shape index: {0}]   ;;  %s3269_s12 = inlined_call_operand.hbm [shape: f32[2,4,8,8], index: 12, kind: output, shape index: {1}]  }
   0x1   :  { %3275 = sst [smem:[#allocation23_spill]] %s3257_s0 }
   0x2   :  { %3276 = sst [smem:[#allocation24_spill]] %s3260_s3 }
   0x3   :  { %3277 = sst [smem:[#allocation25_spill]] %s3261_s4 }
   0x4   :  { %3278 = sst [smem:[#allocation26_spill]] %s3265_s8 }
   0x5   :  { %3279 = sst [smem:[#allocation27_spill]] %s3268_s11 }
   0x6   :  { %3280 = sst [smem:[#allocation28_spill]] %s3269_s12 }
   0x7   :  { %18 = vsyncpa [#allocation3], 0 }
   0x8   :  { %20 = vsyncpa [#allocation3 + $0x1], 0 }
   0x9   :  { %21 = vsyncpa [#allocation6], 0 }
   0xa   :  { %22 = vsyncpa [#allocation9], 0 }
   0xb   :  { %23 = vsyncpa [#allocation12], 0 }
   0xc   :  { %24 = vsyncpa [#allocation4], 0 }
   0xd   :  { %26 = vsyncpa [#allocation4 + $0x1], 0 }
   0xe   :  { %27 = vsyncpa [#allocation16], 0 }
   0xf   :  { %29 = vsyncpa [#allocation16 + $0x1], 0  ;;  %s2753_s21 = smov 0   ;;  %s2755_s22 = smov 0  }
  0x10   :  { %s2757_s23 = smov 0   ;;  %s2759_s24 = smov 0  }
  0x11 LB: > { %s2669_s25 = smov [#allocation5]   ;;  %s2774_s27 = sadd.s32 4294967295, %s2667_s24   ;;  %s2667_s24 = sphi %s2759_s24, %s3309_s24   ;;  %s2663_s23 = sphi %s2757_s23, %s3308_s23   ;;  %s2659_s22 = sphi %s2755_s22, %s3307_s22   ;;  %s2655_s21 = sphi %s2753_s21, %s3306_s21  }
  0x12   : > { %s350_s26 = sshll.u32 %s2669_s25, 4  ;;  %p2009_p0 = scmp.ge.s32.totalorder %s2667_s24, 1  ;;  %s2779_s26 = int_to_ptr.vmem [resolvable:$true] %s350_s26 }
  0x13   : > { %p3272_p1 = scmp.eq.s32.totalorder %s2774_s27, 0  ;;  %p338_p2 = scmp.lt.s32.totalorder %s2667_s24, 3 }
  0x14   : > { %s2670_s29 = smov [#allocation8]   ;;  %s2671_s14 = smov [#allocation11]  }
  0x15   : > { %p2781_p3 = pnand %p2009_p0, %p338_p2  ;;  %s380_s30 = sshll.u32 %s2670_s29, 4  ;;  %s2794_s30 = int_to_ptr.vmem [resolvable:$true] %s380_s30 }
  0x16   : > { %s406_s15 = sshll.u32 %s2671_s14, 4  ;;  %s3283_s3 = sld [smem:[#allocation24_spill]]  ;;  %s2796_s15 = int_to_ptr.vmem [resolvable:$true] %s406_s15 }
  0x17   : > { %s3281_s28 = scalar_select %p2781_p3, 1, 0 }
  0x18   : > { %p2251_p5 = pneg %p2781_p3 }
  0x1a   : > { %p2790_p6 = pnand %p2251_p5, %p3272_p1 }
  0x1c   : > { %s2359_s18 = scalar_lea.hbm %s3283_s3, 512  ;;  %p2806_p8 = pneg %p2790_p6 }
  0x1d   : > { %p2360_p7 = scmp.ne.s32.totalorder %s3283_s3, %s2359_s18  ;;  %p2366_p11 = scmp.lt.u32.totalorder %s2359_s18, %s3283_s3 }
  0x1f   : > { %p2362_p9 = pnand %p2806_p8, %p2360_p7 }
  0x21   : > { %p2363_p10 = pneg %p2362_p9 }
  0x23   : > { %p2368_p12 = pnand %p2366_p11, %p2363_p10 }
  0x25   : > { %2371 = shalt.err (!%p2368_p12)
}
  0x26   : > { %s2372_s16 = scalar_lea.vmem %s2779_s26, 512  ;;  %p2380_p5 = scmp.lt.s32.totalorder %s2779_s26, %s2779_s26 }
  0x27   : > { %p2373_p13 = scmp.ne.s32.totalorder %s2779_s26, %s2372_s16  ;;  %p2381_p4 = scmp.lt.s32.totalorder %s2372_s16, %s2372_s16 }
  0x29   : > { %p2375_p0 = pnand %p2373_p13, %p2806_p8  ;;  %p2382_p7 = por %p2381_p4, %p2380_p5 }
  0x2b   : > { %p2376_p2 = pneg %p2375_p0 }
  0x2d   : > { %p2383_p9 = pnand %p2382_p7, %p2376_p2 }
  0x2f   : > { %2386 = shalt.err (!%p2383_p9)
}
  0x30   : > { %s2672_s17 = smov 128   ;;  %s2673_s18 = smov 8  }
  0x31   : > { %2254 = dma.hbm_to_vmem [thread:$0]  (!%p2790_p6), %s3283_s3, 512, %s2779_s26, [#allocation6], %s2672_s17, %s2672_s17, %s2673_s18  }
  0x32   : > { %s2387_s16 = scalar_lea.hbm %s3263_s6, 16 }
  0x33   : > { %p2388_p4 = scmp.ne.s32.totalorder %s3263_s6, %s2387_s16  ;;  %p2394_p12 = scmp.lt.u32.totalorder %s2387_s16, %s3263_s6 }
  0x35   : > { %p2390_p10 = pnand %p2388_p4, %p2806_p8 }
  0x37   : > { %p2391_p11 = pneg %p2390_p10 }
  0x39   : > { %p2396_p13 = pnand %p2394_p12, %p2391_p11 }
  0x3b   : > { %2399 = shalt.err (!%p2396_p13)
}
  0x3c   : > { %s2400_s26 = scalar_lea.vmem %s2794_s30, 16  ;;  %s2407_s11 = scalar_lea.vmem %s2794_s30, 32 }
  0x3d   : > { %p2401_p0 = scmp.ne.s32.totalorder %s2794_s30, %s2400_s26  ;;  %p2408_p7 = scmp.lt.s32.totalorder %s2794_s30, %s2794_s30 }
  0x3e   : > { %p2409_p9 = scmp.lt.s32.totalorder %s2407_s11, %s2400_s26 }
  0x3f   : > { %p2403_p2 = pnand %p2401_p0, %p2806_p8 }
  0x40   : > { %p2410_p4 = por %p2409_p9, %p2408_p7 }
  0x41   : > { %p2404_p5 = pneg %p2403_p2 }
  0x43   : > { %p2411_p10 = pnand %p2410_p4, %p2404_p5 }
  0x45   : > { %2414 = shalt.err (!%p2411_p10)
}
  0x46   : > { %2260 = dma.hbm_to_vmem [thread:$0]  (!%p2790_p6), %s3263_s6, 16, %s2794_s30, [#allocation9]  }
  0x47   : > { %s2415_s20 = scalar_lea.hbm %s3266_s9, 512 }
  0x48   : > { %p2416_p11 = scmp.ne.s32.totalorder %s3266_s9, %s2415_s20  ;;  %p2422_p0 = scmp.lt.u32.totalorder %s2415_s20, %s3266_s9 }
  0x4a   : > { %p2418_p12 = pnand %p2416_p11, %p2806_p8 }
  0x4c   : > { %p2419_p13 = pneg %p2418_p12 }
  0x4e   : > { %p2424_p2 = pnand %p2422_p0, %p2419_p13 }
  0x50   : > { %2427 = shalt.err (!%p2424_p2)
}
  0x51   : > { %s2428_s30 = scalar_lea.vmem %s2796_s15, 512  ;;  %p2436_p4 = scmp.lt.s32.totalorder %s2796_s15, %s2796_s15 }
  0x52   : > { %p2429_p5 = scmp.ne.s32.totalorder %s2796_s15, %s2428_s30  ;;  %p2437_p10 = scmp.lt.s32.totalorder %s2428_s30, %s2428_s30 }
  0x54   : > { %p2431_p7 = pnand %p2429_p5, %p2806_p8  ;;  %p2438_p11 = por %p2437_p10, %p2436_p4 }
  0x56   : > { %p2432_p9 = pneg %p2431_p7 }
  0x58   : > { %p2439_p12 = pnand %p2438_p11, %p2432_p9 }
  0x5a   : > { %2442 = shalt.err (!%p2439_p12)
}
  0x5b   : > { %2266 = dma.hbm_to_vmem [thread:$0]  (!%p2790_p6), %s3266_s9, 512, %s2796_s15, [#allocation12], %s2672_s17, %s2672_s17, %s2673_s18  }
  0x5c   : > { %s2674_s8 = smov [#allocation7]   ;;  %s2675_s19 = smov [#allocation10]  }
  0x5d   : > { %s366_s12 = sshll.u32 %s2674_s8, 4  ;;  %s390_s20 = sshll.u32 %s2675_s19, 4  ;;  %s367_s12 = int_to_ptr.vmem [resolvable:$true] %s366_s12  ;;  %s391_s20 = int_to_ptr.vmem [resolvable:$true] %s390_s20 }
  0x5e   : > { %s2443_s16 = scalar_lea.hbm %s3262_s5, 512 }
  0x5f   : > { %p2444_p13 = scmp.ne.s32.totalorder %s3262_s5, %s2443_s16  ;;  %p2450_p5 = scmp.lt.u32.totalorder %s2443_s16, %s3262_s5 }
  0x61   : > { %p2446_p0 = pnand %p2444_p13, %p2806_p8 }
  0x63   : > { %p2447_p2 = pneg %p2446_p0 }
  0x65   : > { %p2452_p7 = pnand %p2450_p5, %p2447_p2 }
  0x67   : > { %2455 = shalt.err (!%p2452_p7)
}
  0x68   : > { %s2456_s15 = scalar_lea.vmem %s367_s12, 512  ;;  %p2464_p11 = scmp.lt.s32.totalorder %s367_s12, %s367_s12 }
  0x69   : > { %p2457_p9 = scmp.ne.s32.totalorder %s367_s12, %s2456_s15  ;;  %p2465_p12 = scmp.lt.s32.totalorder %s2456_s15, %s2456_s15 }
  0x6b   : > { %p2459_p4 = pnand %p2457_p9, %p2806_p8  ;;  %p2466_p1 = por %p2465_p12, %p2464_p11 }
  0x6d   : > { %p2460_p10 = pneg %p2459_p4 }
  0x6f   : > { %p2467_p3 = pnand %p2466_p1, %p2460_p10 }
  0x71   : > { %2470 = shalt.err (!%p2467_p3)
}
  0x72   : > { %2257 = dma.hbm_to_vmem [thread:$0]  (!%p2790_p6), %s3262_s5, 512, %s367_s12, [#allocation6], %s2672_s17, %s2672_s17, %s2673_s18  }
  0x73   : > { %s2471_s29 = scalar_lea.hbm %s3264_s7, 512 }
  0x74   : > { %p2472_p1 = scmp.ne.s32.totalorder %s3264_s7, %s2471_s29  ;;  %p2478_p0 = scmp.lt.u32.totalorder %s2471_s29, %s3264_s7 }
  0x76   : > { %p2474_p3 = pnand %p2472_p1, %p2806_p8 }
  0x78   : > { %p2475_p13 = pneg %p2474_p3 }
  0x7a   : > { %p2480_p2 = pnand %p2478_p0, %p2475_p13 }
  0x7c   : > { %2483 = shalt.err (!%p2480_p2)
}
  0x7d   : > { %s2484_s11 = scalar_lea.vmem %s391_s20, 512  ;;  %p2492_p4 = scmp.lt.s32.totalorder %s391_s20, %s391_s20 }
  0x7e   : > { %p2485_p5 = scmp.ne.s32.totalorder %s391_s20, %s2484_s11  ;;  %p2493_p10 = scmp.lt.s32.totalorder %s2484_s11, %s2484_s11 }
  0x80   : > { %p2487_p7 = pnand %p2485_p5, %p2806_p8  ;;  %p2494_p11 = por %p2493_p10, %p2492_p4 }
  0x82   : > { %p2488_p9 = pneg %p2487_p7 }
  0x84   : > { %p2495_p12 = pnand %p2494_p11, %p2488_p9 }
  0x86   : > { %2498 = shalt.err (!%p2495_p12)
}
  0x87   : > { %2263 = dma.hbm_to_vmem [thread:$0]  (!%p2790_p6), %s3264_s7, 512, %s391_s20, [#allocation9], %s2672_s17, %s2672_s17, %s2673_s18  }
  0x88   : > { %s2676_s3 = smov [#allocation13]   ;;  %s2499_s29 = scalar_lea.hbm %s3267_s10, 16 }
  0x89   : > { %s420_s4 = sshll.u32 %s2676_s3, 4  ;;  %p2500_p1 = scmp.ne.s32.totalorder %s3267_s10, %s2499_s29  ;;  %s421_s4 = int_to_ptr.vmem [resolvable:$true] %s420_s4 }
  0x8a   : > { %p2506_p0 = scmp.lt.u32.totalorder %s2499_s29, %s3267_s10 }
  0x8b   : > { %p2502_p3 = pnand %p2500_p1, %p2806_p8 }
  0x8d   : > { %p2503_p13 = pneg %p2502_p3 }
  0x8f   : > { %p2508_p2 = pnand %p2506_p0, %p2503_p13 }
  0x91   : > { %2511 = shalt.err (!%p2508_p2)
}
  0x92   : > { %s2512_s17 = scalar_lea.vmem %s421_s4, 16  ;;  %s2519_s18 = scalar_lea.vmem %s421_s4, 32 }
  0x93   : > { %p2513_p5 = scmp.ne.s32.totalorder %s421_s4, %s2512_s17  ;;  %p2520_p4 = scmp.lt.s32.totalorder %s421_s4, %s421_s4 }
  0x94   : > { %p2521_p10 = scmp.lt.s32.totalorder %s2519_s18, %s2512_s17 }
  0x95   : > { %p2515_p7 = pnand %p2513_p5, %p2806_p8 }
  0x96   : > { %p2522_p11 = por %p2521_p10, %p2520_p4 }
  0x97   : > { %p2516_p9 = pneg %p2515_p7 }
  0x99   : > { %p2523_p12 = pnand %p2522_p11, %p2516_p9 }
  0x9b   : > { %2526 = shalt.err (!%p2523_p12)
}
  0x9c   : > { %2269 = dma.hbm_to_vmem [thread:$0]  (!%p2790_p6), %s3267_s10, 16, %s421_s4, [#allocation12]  }
  0x9d   : > { %s2008_s25 = sadd.s32 4294967294, %s2667_s24   ;;  %s2942_s13 = sadd.s32 1, %s2667_s24  }
  0x9e   : > { %s91_s12 = ssub.s32 %s2667_s24, %s2942_s13  ;;  %s94_s15 = sadd.s32 1, %s2663_s23 }
  0x9f   : > { %p92_p8 = scmp.eq.s32.totalorder %s91_s12, 0  ;;  %p101_p1 = scmp.ne.s32.totalorder %s2663_s23, %s2659_s22 }
  0xa0   : > { %p102_p3 = scmp.eq.s32.totalorder %s2667_s24, 0  ;;  %p107_p13 = scmp.ne.s32.totalorder %s2659_s22, %s2655_s21 }
  0xa1   : > { %s2953_s3 = scalar_select %p92_p8, %s2663_s23, %s94_s15  }
  0xa2   : > { %p2955_p0 = por %p102_p3, %p101_p1  ;;  %p3286_p2 = scmp.eq.s32.totalorder %s2774_s27, 0 }
  0xa3   : > { %p299_p5 = scmp.eq.s32.totalorder %s2774_s27, 1  ;;  %p305_p7 = scmp.eq.s32.totalorder %s2008_s25, 1 }
  0xa4   : > { %p2961_p6 = por %p3286_p2, %p107_p13  ;;  %p2287_p9 = scmp.lt.s32.totalorder %s2667_s24, 2 }
  0xa5   : > { %s445_s19 = sand.u32 1, %s2663_s23   ;;  %p2968_p4 = por %p299_p5, %p101_p1 }
  0xa6   : > { %p2972_p10 = por %p305_p7, %p107_p13  ;;  %s2017_s16 = sshll.u32 %s445_s19, 3 }
  0xa7   : > { %s3288_s29 = scalar_select %p2968_p4, 1, 0 }
  0xa8   : > { %s3289_s14 = scalar_select %p2972_p10, 1, 0 }
  0xa9   : > { %s2018_s26 = sshll.u32 %s2667_s24, 7  ;;  %s449_s20 = scalar_lea.vmem [#allocation2], %s2017_s16 }
  0xaa   : > { %s2980_s18 = scalar_lea.hbm %s3259_s2, %s2018_s26  ;;  %s456_s11 = sshll.u32 %s449_s20, 4  ;;  %s2982_s11 = int_to_ptr.vmem [resolvable:$true] %s456_s11 }
  0xab   : > { %p2986_p11 = pnand %p2287_p9, %p2955_p0  ;;  %s446_s12 = scalar_lea.sflag [#allocation3], %s445_s19 }
  0xac   : > { %s2527_s15 = scalar_lea.hbm %s2980_s18, 128  ;;  %s2532_s30 = scalar_lea.hbm %s3259_s2, 256 }
  0xad   : > { %p2528_p12 = scmp.ne.s32.totalorder %s2980_s18, %s2527_s15  ;;  %p2529_p8 = pneg %p2986_p11 }
  0xae   : > { %p2533_p13 = scmp.lt.u32.totalorder %s2980_s18, %s3259_s2  ;;  %p2534_p0 = scmp.lt.u32.totalorder %s2532_s30, %s2527_s15 }
  0xaf   : > { %p2530_p1 = pnand %p2529_p8, %p2528_p12  ;;  %p2536_p5 = scmp.lt.u32.totalorder %s2527_s15, %s2980_s18 }
  0xb0   : > { %p2535_p2 = por %p2534_p0, %p2533_p13 }
  0xb1   : > { %p2531_p3 = pneg %p2530_p1 }
  0xb2   : > { %p2537_p7 = por %p2536_p5, %p2535_p2 }
  0xb4   : > { %p2538_p9 = pnand %p2537_p7, %p2531_p3 }
  0xb6   : > { %2541 = shalt.err (!%p2538_p9)
}
  0xb7   : > { %s2542_s19 = scalar_lea.vmem %s2982_s11, 128  ;;  %s2677_s20 = smov [#allocation2]  }
  0xb8   : > { %p2543_p12 = scmp.ne.s32.totalorder %s2982_s11, %s2542_s19  ;;  %s2547_s16 = sshll.u32 %s2677_s20, 4  ;;  %s2548_s16 = int_to_ptr.vmem [resolvable:$false] %s2547_s16 }
  0xb9   : > { %s2549_s26 = scalar_lea.vmem %s2548_s16, 256  ;;  %p2550_p4 = scmp.lt.s32.totalorder %s2982_s11, %s2548_s16 }
  0xba   : > { %p2545_p1 = pnand %p2543_p12, %p2529_p8  ;;  %p2551_p13 = scmp.lt.s32.totalorder %s2549_s26, %s2542_s19 }
  0xbc   : > { %p2546_p10 = pneg %p2545_p1  ;;  %p2552_p0 = por %p2551_p13, %p2550_p4 }
  0xbe   : > { %p2553_p2 = pnand %p2552_p0, %p2546_p10 }
  0xc0   : > { %2556 = shalt.err (!%p2553_p2)
}
  0xc1   : > { %2273 = dma.hbm_to_vmem [thread:$0]  (!%p2986_p11), %s2980_s18, 128, %s2982_s11, %s446_s12  }
  0xc2   : > { %p3291_p3 = scmp.ne.s32.totalorder %s3281_s28, 0 }
  0xc3   : > { %s3018_s15 = sand.u32 (!%p3291_p3), 1, %s2659_s22  }
  0xc4   : > { %465 = sbr.rel (%p3291_p3) target bundleno = 2688 (0xa80), region = 64  ;;  %s2020_s30 = sshll.u32 (!%p3291_p3), %s3018_s15, 3 }
  0xc5   : > { %s468_s8 = scalar_lea.sflag (!%p3291_p3), [#allocation3], %s3018_s15  ;;  %s3024_s17 = scalar_lea.vmem (!%p3291_p3), [#allocation2], %s2020_s30 }
  0xcb   : > { %2630 = dma.done.wait (%p2961_p6), %s468_s8, 128  }
  0xcc   : > { %2632 = vsyncadd (%p2961_p6), %s468_s8, 4294967168  ;;  %p3292_p4 = scmp.eq.s32.totalorder %s2774_s27, 0 }
  0xce   : > { %2634 = dma.done.wait (%p3292_p4), [#allocation6], 1024   ;;  %p3293_p10 = pmov %p3292_p4 }
  0xcf   : > { %p3294_p11 = pmov %p3292_p4 }
  0xd0   : > { %2636 = vsyncadd (%p3293_p10), [#allocation6], 4294966272 }
  0xd1   : > { %2638 = dma.done.wait (%p3294_p11), [#allocation9], 528   ;;  %p3295_p8 = pmov %p3292_p4 }
  0xd2   : > { %p3296_p5 = pmov %p3292_p4 }
  0xd3   : > { %2640 = vsyncadd (%p3295_p8), [#allocation9], 4294966768 }
  0xd4   : > { %2642 = dma.done.wait (%p3296_p5), [#allocation12], 528   ;;  %p3297_p7 = pmov %p3292_p4 }
  0xd5   : > { %p549_p6 = scmp.lt.s32.totalorder %s2774_s27, 1  ;;  %v2678_v0 = vmov 0.0|0.0   ;;  %vm2679_vm0 = vmmov 0   ;;  %v2680_v1 = vmov 0.0   ;;  %v644_v2 = vld [vmem:[#allocation7] sm:$0xff]  ;;  %v645_v3 = vld [vmem:[#allocation7 + $0x8] sm:$0xff] }
  0xd6   : > { %2644 = vsyncadd (%p3297_p7), [#allocation12], 4294966768  ;;  %2203 = vmatprep.subr.bf16.mxu1 %v2678_v0  ;;  %2197 = vmatprep.subr.bf16.mxu0 %v2678_v0  ;;  %v558_v4 = vld [vmem:[#allocation5] sm:$0xff]  ;;  %v2204_v5 = vpack.c.bf16 %v645_v3, %v644_v2  ;;  %v559_v6 = vld [vmem:[#allocation5 + $0x8] sm:$0xff]  ;;  %s3298_s0 = sld [smem:[#allocation23_spill]]  ;;  %vm569_vm1 = vcmask 261120  }
  0xd7   : > { %2123 = vmatprep.mubr.msk.f32.mxu1 %vm2679_vm0, %v2680_v1  ;;  %2112 = vmatprep.mubr.msk.f32.mxu0 %vm2679_vm0, %v2680_v1  ;;  %s550_s28 = scalar_select %p549_p6, %s2774_s27, 1  ;;  %v646_v7 = vld [vmem:[#allocation7 + $0x10] sm:$0xff]  ;;  %v647_v8 = vld [vmem:[#allocation7 + $0x18] sm:$0xff]  ;;  %v2198_v9 = vpack.c.bf16 %v559_v6, %v558_v4  ;;  %v2033_v16 = vld [vmem:[#allocation8] ss:$0 sm:$0xff]  ;;  %vm825_vm2 = vcmask 64512  }
  0xd8   : > { %v560_v10 = vld [vmem:[#allocation5 + $0x10] sm:$0xff]  ;;  %v561_v11 = vld [vmem:[#allocation5 + $0x18] sm:$0xff]  ;;  %2205 = vmatpush3.bf16.msra.mxu1 %v2204_v5  ;;  %v2207_v12 = vpack.c.bf16 %v647_v8, %v646_v7  ;;  %s3299_s8 = sld [smem:[#allocation25_spill]]  ;;  %v729_v24 = vld [vmem:[#allocation10] sm:$0xff]  ;;  %s3300_s11 = sld [smem:[#allocation26_spill]] }
  0xd9   : > { %s2029_s4 = sshll.u32 %s550_s28, 3  ;;  %2199 = vmatpush3.bf16.msra.mxu0 %v2198_v9  ;;  %2206 = vmatprep.subr.bf16.mxu1 %v2678_v0  ;;  %v2201_v13 = vpack.c.bf16 %v561_v11, %v560_v10  ;;  %s2681_s28 = smov 120   ;;  %v730_v25 = vld [vmem:[#allocation10 + $0x8] sm:$0xff]  ;;  %v731_v26 = vld [vmem:[#allocation10 + $0x10] sm:$0xff]  ;;  %v732_v28 = vld [vmem:[#allocation10 + $0x18] sm:$0xff] }
  0xda   : > { %s556_s25 = scalar_lea.vmem %s3258_s1, %s2029_s4  ;;  %2200 = vmatprep.subr.bf16.mxu0 %v2678_v0  ;;  %v2210_v27 = vpack.c.bf16 %v730_v25, %v729_v24  ;;  %v2213_v29 = vpack.c.bf16 %v732_v28, %v731_v26  ;;  %v728_v30 = vld [vmem:[%s3024_s17] sm:$0xff]  ;;  %v813_v47 = vld [vmem:[#allocation11] sm:$0xff]  ;;  %s2683_s19 = smov 104  }
  0xdb   : > { %v643_v14 = vld [vmem:[%s556_s25] sm:$0xff]  ;;  %s2028_s25 = sshll.u32 %s3018_s15, 5  ;;  %v815_v28 = vld [vmem:[#allocation11 + $0x10] sm:$0xff]  ;;  %s1796_s17 = scalar_lea.sflag [#allocation16], %s3018_s15 }
  0xdc   : > { %s552_s20 = scalar_lea.vmem %s3298_s0, %s2029_s4  ;;  %2208 = vmatpush3.bf16.msra.mxu1 %v2207_v12  ;;  %s2682_s4 = smov 112  }
  0xdd   : > { %2202 = vmatpush3.bf16.msra.mxu0 %v2201_v13  ;;  %v557_v15 = vld [vmem:[%s552_s20] sm:$0xff]  ;;  %2137 = vmatprep.subr.mxu1 %v2680_v1  ;;  %s3104_s12 = scalar_lea.vmem [#allocation15], %s2028_s25  ;;  %s2064_s20 = sshll.u32 %s2774_s27, 9 }
  0xde   : > { %2209 = vmatprep.subr.bf16.mxu0 %v2678_v0  ;;  %v2031_v17 = vld [vmem:[%s3299_s8] ss:$0 sm:$0xff]  ;;  %s1822_s16 = sshll.u32 %s3104_s12, 4  ;;  %p3302_p12 = scmp.ne.s32.totalorder %s3288_s29, 0  ;;  %s3179_s16 = int_to_ptr.vmem [resolvable:$true] %s1822_s16 }
  0xdf   : > { %2124 = vmatmul.mubr.msk.f32.vlgmr.msra.gmra.mrb[0].mxu1 %vm569_vm1, %v643_v14  ;;  %v2035_v41 = vld [vmem:[%s3300_s11] ss:$0 sm:$0xff]  ;;  %s2557_s18 = scalar_lea.vmem %s3179_s16, 512  ;;  %s2684_s11 = smov [#allocation15]  }
  0xe0   : > { %2113 = vmatmul.mubr.msk.f32.vlgmr.msra.gmra.mrb[0].mxu0 %vm569_vm1, %v557_v15  ;;  %2139 = vmatprep.mubr.msk.f32.mxu1 %vm2679_vm0, %v2680_v1  ;;  %p2558_p9 = scmp.ne.s32.totalorder %s3179_s16, %s2557_s18  ;;  %s2561_s25 = sshll.u32 %s2684_s11, 4  ;;  %s2562_s25 = int_to_ptr.vmem [resolvable:$false] %s2561_s25 }
  0xe1   : > { %2134 = vmatprep.mubr.msk.f32.mxu0 %vm2679_vm0, %v2680_v1  ;;  %2211 = vmatpush3.bf16.msra.mxu0 %v2210_v27  ;;  %p2564_p0 = scmp.lt.s32.totalorder %s3179_s16, %s2562_s25 }
  0xe2   : > { %2212 = vmatprep.subr.bf16.mxu0 %v2678_v0  ;;  %p2559_p1 = pnand %p2558_p9, %p3302_p12 }
  0xe4   : > { %p2560_p13 = pneg %p2559_p1 }
  0xe5   : > { %2214 = vmatpush3.bf16.msra.mxu0 %v2213_v29 }
  0xe6   : > { %2157 = vmatprep.subr.mxu0 %v2680_v1 }
  0xe8   : > { %2135 = vmatmul.mubr.msk.f32.vlgmr.msra.gmra.mrb[2].mxu0 %vm569_vm1, %v728_v30 }
  0xe9   : > { %2159 = vmatprep.mubr.msk.f32.mxu0 %vm2679_vm0, %v2680_v1 }
 0x1b2   : > { %v724_v18 = vpop.f32.mrb[0].mxu1 }
 0x1b3   : > { %v3069_v19 = vadd.f32 %v2033_v16, %v724_v18  ;;  %v2125_v20 = vpop.f32.mrb[1].mxu1  ;;  %v639_v21 = vpop.f32.mrb[0].mxu0 }
 0x1b4   : > { %v3071_v22 = vadd.f32 %v2031_v17, %v639_v21  ;;  %v2114_v23 = vpop.f32.mrb[1].mxu0  ;;  %v814_v21 = vld [vmem:[#allocation11 + $0x8] sm:$0xff] }
 0x1b5   : > { %1064 = vrot.lane.b32.xlu1 %v3069_v19, %s2681_s28  ;;  %2138 = vmatpush3.xpose.msk.msra.mxu1 %vm825_vm2, %v3069_v19 }
 0x1b6   : > { %2142 = vmatprep.subr.mxu1 %v2680_v1 }
 0x1b8   : > { %2140 = vmatmul.mubr.msk.f32.vlgmr.msra.gmra.mrb[2].mxu1 %vm825_vm2, %v3071_v22 }
 0x1b9   : > { %1062 = vrot.lane.b32.xlu1 %v3071_v22, %s2681_s28  ;;  %2144 = vmatprep.mubr.msk.f32.mxu1 %vm2679_vm0, %v2680_v1 }
 0x1bb   : > { %v809_v40 = vpop.f32.mrb[2].mxu0 }
 0x1bc   : > { %v2136_v42 = vpop.f32.mrb[3].mxu0  ;;  %v3099_v43 = vadd.f32 %v2035_v41, %v809_v40  ;;  %v816_v40 = vld [vmem:[#allocation11 + $0x18] sm:$0xff] }
 0x1bd   : > { %1305 = vrot.lane.b32.xlu1 %v3071_v22, %s2682_s4 }
 0x1be   : > { %2143 = vmatpush3.msra.mxu1 %v3099_v43 }
 0x1bf   : > { %2147 = vmatprep.subr.mxu1 %v2680_v1 }
 0x227   : > { %v1065_v48 = vpop.permute.xlu1 %1064 }
 0x22b   : > { %v1063_v51 = vpop.permute.xlu1 %1062 }
 0x22f   : > { %v1306_v53 = vpop.permute.xlu1 %1305 }
 0x28b   : > { %v898_v31 = vpop.f32.mrb[2].mxu1 }
 0x28c   : > { %v902_v32 = vmul.f32 0.35355338, %v898_v31  ;;  %v2141_v33 = vpop.f32.mrb[3].mxu1 }
 0x28e   : > { %v903_v34 = vsel %vm825_vm2, %v902_v32, -inf }
 0x28f   : > { %904 = vmax.xlane.f32.xlu0 %v903_v34 }
 0x31c   : > { %v905_v35 = vpop.xlane.xlu0 %904 }
 0x31d   : > { %v906_v36 = vsub.f32 %v902_v32, %v905_v35 }
 0x31f   : > { %v907_v37 = vmul.f32 1.442695, %v906_v36 }
 0x321   : > { %2343 = vpow2.f32 %v907_v37 }
 0x32b   : > { %v2344_v38 = vpop.eup %2343 }
 0x32c   : > { %v909_v39 = vsel %vm825_vm2, %v2344_v38, 0.0 }
 0x32d   : > { %910 = vadd.xlane.f32.xlu0 %v909_v39 }
 0x343   : > { %1307 = vrot.lane.b32.xlu0 %v3069_v19, %s2682_s4 }
 0x3ba   : > { %v911_v44 = vpop.xlane.xlu0 %910 }
 0x3bb   : > { %2345 = vrcp.f32 %v911_v44 }
 0x3be   : > { %v1308_v52 = vpop.permute.xlu0 %1307 }
 0x3c5   : > { %v2346_v45 = vpop.eup %2345 }
 0x3c6   : > { %v913_v46 = vmul.f32 %v2346_v45, %v2344_v38 }
 0x3c8   : > { %914 = vst.msk [vmem:[%s3104_s12] sm:$0xff] %vm825_vm2, %v913_v46  ;;  %2145 = vmatmul.mubr.msk.f32.vlgmr.msra.gmra.mrb[4].mxu1 %vm825_vm2, %v913_v46 }
 0x3c9   : > { %2148 = vmatpush3.msra.mxu1 %v813_v47  ;;  %2149 = vmatprep.mubr.msk.f32.mxu1 %vm2679_vm0, %v2680_v1 }
 0x3ca   : > { %2152 = vmatprep.subr.mxu1 %v2680_v1 }
 0x49b   : > { %v984_v49 = vpop.f32.mrb[4].mxu1 }
 0x49c   : > { %v2146_v50 = vpop.f32.mrb[5].mxu1  ;;  %2150 = vmatmul.mubr.msk.f32.vlgmr.msra.gmra.mrb[6].mxu1 %vm825_vm2, %v984_v49 }
 0x49d   : > { %2153 = vmatpush3.xpose.msk.msra.mxu1 %vm825_vm2, %v1065_v48  ;;  %2154 = vmatprep.mubr.msk.f32.mxu1 %vm2679_vm0, %v2680_v1 }
 0x49e   : > { %2167 = vmatprep.subr.mxu1 %v2680_v1 }
 0x4a0   : > { %2155 = vmatmul.mubr.msk.f32.vlgmr.msra.gmra.mrb[8].mxu1 %vm825_vm2, %v1063_v51 }
 0x4a1   : > { %2168 = vmatpush3.xpose.msk.msra.mxu1 %vm825_vm2, %v1308_v52  ;;  %2169 = vmatprep.mubr.msk.f32.mxu1 %vm2679_vm0, %v2680_v1 }
 0x4a2   : > { %2172 = vmatprep.subr.mxu1 %v2680_v1 }
 0x4a4   : > { %2170 = vmatmul.mubr.msk.f32.vlgmr.msra.gmra.mrb[10].mxu1 %vm825_vm2, %v1306_v53 }
 0x4a5   : > { %2174 = vmatprep.mubr.msk.f32.mxu1 %vm2679_vm0, %v2680_v1 }
 0x56f   : > { %v3125_v54 = vpop.f32.mrb[6].mxu1 }
 0x570   : > { %v2151_v55 = vpop.f32.mrb[7].mxu1 }
 0x573   : > { %v1136_v56 = vpop.f32.mrb[8].mxu1 }
 0x574   : > { %v2156_v57 = vpop.f32.mrb[9].mxu1  ;;  %v1140_v62 = vmul.f32 0.35355338, %v1136_v56 }
 0x576   : > { %v1141_v63 = vsel %vm825_vm2, %v1140_v62, -inf }
 0x577   : > { %v1379_v58 = vpop.f32.mrb[10].mxu1 }
 0x578   : > { %v1383_v59 = vmul.f32 0.35355338, %v1379_v58  ;;  %v2171_v60 = vpop.f32.mrb[11].mxu1 }
 0x57a   : > { %v1384_v61 = vsel %vm825_vm2, %v1383_v59, -inf }
 0x57b   : > { %1385 = vmax.xlane.f32.xlu1 %v1384_v61 }
 0x58c   : > { %1397 = vrot.lane.b32.xlu1 %v3099_v43, %s2682_s4 }
 0x590   : > { %1547 = vrot.lane.b32.xlu1 %v3071_v22, %s2683_s19 }
 0x5b4   : > { %1142 = vmax.xlane.f32.xlu1 %v1141_v63 }
 0x5c5   : > { %1155 = vrot.lane.b32.xlu1 %v3099_v43, %s2681_s28  ;;  %s3301_s28 = sld [smem:[#allocation28_spill]] }
 0x5cb   : > { %s3177_s4 = scalar_lea.hbm %s3301_s28, %s2064_s20 }
 0x608   : > { %v1386_v0 = vpop.xlane.xlu1 %1385 }
 0x609   : > { %v1387_v2 = vsub.f32 %v1383_v59, %v1386_v0 }
 0x60b   : > { %v1388_v3 = vmul.f32 1.442695, %v1387_v2 }
 0x60c   : > { %v1398_v4 = vpop.permute.xlu1 %1397 }
 0x60d   : > { %2347 = vpow2.f32 %v1388_v3  ;;  %2173 = vmatpush3.msra.mxu1 %v1398_v4 }
 0x60e   : > { %2182 = vmatprep.subr.mxu1 %v2680_v1 }
 0x610   : > { %v1548_v7 = vpop.permute.xlu1 %1547 }
 0x617   : > { %v2348_v5 = vpop.eup %2347 }
 0x618   : > { %v1390_v6 = vsel %vm825_vm2, %v2348_v5, 0.0 }
 0x619   : > { %1391 = vadd.xlane.f32.xlu0 %v1390_v6 }
 0x62f   : > { %1549 = vrot.lane.b32.xlu0 %v3069_v19, %s2683_s19 }
 0x641   : > { %v1143_v8 = vpop.xlane.xlu1 %1142 }
 0x642   : > { %v1144_v9 = vsub.f32 %v1140_v62, %v1143_v8 }
 0x644   : > { %v1145_v10 = vmul.f32 1.442695, %v1144_v9 }
 0x645   : > { %v1156_v11 = vpop.permute.xlu1 %1155 }
 0x646   : > { %2349 = vpow2.f32 %v1145_v10  ;;  %2158 = vmatpush3.msra.mxu0 %v1156_v11 }
 0x647   : > { %2162 = vmatprep.subr.mxu0 %v2680_v1 }
 0x650   : > { %v2350_v12 = vpop.eup %2349 }
 0x651   : > { %v1147_v13 = vsel %vm825_vm2, %v2350_v12, 0.0 }
 0x652   : > { %1148 = vadd.xlane.f32.xlu0 %v1147_v13 }
 0x6a6   : > { %v1392_v14 = vpop.xlane.xlu0 %1391 }
 0x6a7   : > { %2351 = vrcp.f32 %v1392_v14 }
 0x6aa   : > { %v1550_v17 = vpop.permute.xlu0 %1549 }
 0x6b1   : > { %v2352_v15 = vpop.eup %2351 }
 0x6b2   : > { %v1394_v16 = vmul.f32 %v2352_v15, %v2348_v5 }
 0x6b4   : > { %2049 = vst.msk [vmem:[%s3104_s12 + $0x10] sm:$0xff] %vm825_vm2, %v1394_v16  ;;  %2175 = vmatmul.mubr.msk.f32.vlgmr.msra.gmra.mrb[12].mxu1 %vm825_vm2, %v1394_v16 }
 0x6b5   : > { %2183 = vmatpush3.xpose.msk.msra.mxu1 %vm825_vm2, %v1550_v17  ;;  %2184 = vmatprep.mubr.msk.f32.mxu1 %vm2679_vm0, %v2680_v1 }
 0x6b8   : > { %2185 = vmatmul.mubr.msk.f32.vlgmr.msra.gmra.mrb[14].mxu1 %vm825_vm2, %v1548_v7 }
 0x6df   : > { %v1149_v18 = vpop.xlane.xlu0 %1148 }
 0x6e0   : > { %2353 = vrcp.f32 %v1149_v18 }
 0x6ea   : > { %v2354_v19 = vpop.eup %2353 }
 0x6eb   : > { %v1151_v20 = vmul.f32 %v2354_v19, %v2350_v12 }
 0x6ed   : > { %2044 = vst.msk [vmem:[%s3104_s12 + $0x8] sm:$0xff] %vm825_vm2, %v1151_v20  ;;  %2160 = vmatmul.mubr.msk.f32.vlgmr.msra.gmra.mrb[4].mxu0 %vm825_vm2, %v1151_v20 }
 0x6ee   : > { %2164 = vmatprep.mubr.msk.f32.mxu0 %vm2679_vm0, %v2680_v1  ;;  %2163 = vmatpush3.msra.mxu0 %v814_v21 }
 0x6ef   : > { %2177 = vmatprep.subr.mxu0 %v2680_v1 }
 0x787   : > { %v1469_v22 = vpop.f32.mrb[12].mxu1 }
 0x788   : > { %v2176_v23 = vpop.f32.mrb[13].mxu1 }
 0x78b   : > { %v1621_v24 = vpop.f32.mrb[14].mxu1 }
 0x78c   : > { %v1625_v25 = vmul.f32 0.35355338, %v1621_v24  ;;  %v2186_v26 = vpop.f32.mrb[15].mxu1 }
 0x78e   : > { %v1626_v27 = vsel %vm825_vm2, %v1625_v25, -inf }
 0x78f   : > { %1627 = vmax.xlane.f32.xlu0 %v1626_v27 }
 0x7c0   : > { %v1227_v29 = vpop.f32.mrb[4].mxu0 }
 0x7c1   : > { %v2161_v30 = vpop.f32.mrb[5].mxu0  ;;  %2165 = vmatmul.mubr.msk.f32.vlgmr.msra.gmra.mrb[6].mxu0 %vm825_vm2, %v1227_v29 }
 0x7c2   : > { %2178 = vmatpush3.msra.mxu0 %v815_v28  ;;  %2179 = vmatprep.mubr.msk.f32.mxu0 %vm2679_vm0, %v2680_v1 }
 0x7c3   : > { %2187 = vmatprep.subr.mxu0 %v2680_v1 }
 0x7c9   : > { %2180 = vmatmul.mubr.msk.f32.vlgmr.msra.gmra.mrb[6].mxu0 %vm825_vm2, %v1469_v22 }
 0x7ca   : > { %2189 = vmatprep.mubr.msk.f32.mxu0 %vm2679_vm0, %v2680_v1 }
 0x81c   : > { %v1628_v31 = vpop.xlane.xlu0 %1627 }
 0x81d   : > { %v1629_v32 = vsub.f32 %v1625_v25, %v1628_v31 }
 0x81f   : > { %v1630_v33 = vmul.f32 1.442695, %v1629_v32 }
 0x821   : > { %2355 = vpow2.f32 %v1630_v33 }
 0x82b   : > { %v2356_v34 = vpop.eup %2355 }
 0x82c   : > { %v1632_v35 = vsel %vm825_vm2, %v2356_v34, 0.0 }
 0x82d   : > { %1633 = vadd.xlane.f32.xlu0 %v1632_v35 }
 0x843   : > { %1639 = vrot.lane.b32.xlu0 %v3099_v43, %s2683_s19 }
 0x8ba   : > { %v1634_v36 = vpop.xlane.xlu0 %1633 }
 0x8bb   : > { %2357 = vrcp.f32 %v1634_v36 }
 0x8be   : > { %v1640_v37 = vpop.permute.xlu0 %1639 }
 0x8bf   : > { %2188 = vmatpush3.msra.mxu0 %v1640_v37 }
 0x8c0   : > { %2192 = vmatprep.subr.mxu0 %v2680_v1 }
 0x8c5   : > { %v2358_v38 = vpop.eup %2357 }
 0x8c6   : > { %v1636_v39 = vmul.f32 %v2358_v38, %v2356_v34 }
 0x8c8   : > { %2054 = vst.msk [vmem:[%s3104_s12 + $0x18] sm:$0xff] %vm825_vm2, %v1636_v39  ;;  %2190 = vmatmul.mubr.msk.f32.vlgmr.msra.gmra.mrb[8].mxu0 %vm825_vm2, %v1636_v39  ;;  %s2563_s12 = scalar_lea.vmem %s2562_s25, 1024 }
 0x8c9   : > { %2193 = vmatpush3.msra.mxu0 %v816_v40  ;;  %2194 = vmatprep.mubr.msk.f32.mxu0 %vm2679_vm0, %v2680_v1  ;;  %p2565_p2 = scmp.lt.s32.totalorder %s2563_s12, %s2557_s18 }
 0x8cb   : > { %p2566_p3 = por %p2565_p2, %p2564_p0 }
 0x8cd   : > { %p2567_p4 = pnand %p2566_p3, %p2560_p13 }
 0x99b   : > { %v1711_v41 = vpop.f32.mrb[8].mxu0 }
 0x99c   : > { %v2191_v42 = vpop.f32.mrb[9].mxu0  ;;  %2195 = vmatmul.mubr.msk.f32.vlgmr.msra.gmra.mrb[6].mxu0 %vm825_vm2, %v1711_v41 }
 0x99d   : > { %2570 = shalt.err (!%p2567_p4)
}
 0x99e   : > { %s2571_s19 = scalar_lea.hbm %s3177_s4, 512  ;;  %s2575_s8 = scalar_lea.hbm %s3301_s28, 1024 }
 0x99f   : > { %p2572_p10 = scmp.ne.s32.totalorder %s3177_s4, %s2571_s19  ;;  %p2576_p5 = scmp.lt.u32.totalorder %s3177_s4, %s3301_s28 }
 0x9a0   : > { %p2577_p7 = scmp.lt.u32.totalorder %s2575_s8, %s2571_s19  ;;  %p2579_p9 = scmp.lt.u32.totalorder %s2571_s19, %s3177_s4 }
 0x9a1   : > { %p2573_p11 = pnand %p2572_p10, %p3302_p12 }
 0x9a2   : > { %p2578_p6 = por %p2577_p7, %p2576_p5 }
 0x9a3   : > { %p2574_p8 = pneg %p2573_p11 }
 0x9a4   : > { %p2580_p1 = por %p2579_p9, %p2578_p6 }
 0x9a6   : > { %p2581_p13 = pnand %p2580_p1, %p2574_p8 }
 0x9a8   : > { %2584 = shalt.err (!%p2581_p13)
}
 0x9a9   : > { %s2685_s18 = smov 128   ;;  %s2686_s12 = smov 8   ;;  %v2037_v1 = vld [vmem:[#allocation13] ss:$0 sm:$0xff] }
 0x9aa   : > { %2248 = dma.vmem_to_hbm [thread:$0]  (%p3302_p12), %s3179_s16, 512, %s3177_s4, %s1796_s17, %s2685_s18, %s2685_s18, %s2686_s12   ;;  %v1061_v43 = vadd.f32 %v2037_v1, %v3125_v54 }
 0x9ab   : > { %s2059_s20 = sshll.u32 %s2774_s27, 7  ;;  %s541_s19 = scalar_lea.vmem [#allocation14], %s2020_s30 }
 0x9ac   : > { %s1809_s26 = sshll.u32 %s541_s19, 4  ;;  %s3303_s25 = sld [smem:[#allocation27_spill]]  ;;  %s3214_s26 = int_to_ptr.vmem [resolvable:$true] %s1809_s26 }
 0x9ad   : > { %s1791_s27 = scalar_lea.sflag [#allocation4], %s3018_s15  ;;  %s2585_s30 = scalar_lea.vmem %s3214_s26, 128 }
 0x9ae   : > { %p2586_p0 = scmp.ne.s32.totalorder %s3214_s26, %s2585_s30  ;;  %s2687_s16 = smov [#allocation14]  }
 0x9af   : > { %s2589_s4 = sshll.u32 %s2687_s16, 4  ;;  %s2590_s4 = int_to_ptr.vmem [resolvable:$false] %s2589_s4 }
 0x9b0   : > { %p2587_p2 = pnand %p2586_p0, %p3302_p12  ;;  %s2591_s17 = scalar_lea.vmem %s2590_s4, 256 }
 0x9b1   : > { %p2592_p4 = scmp.lt.s32.totalorder %s3214_s26, %s2590_s4  ;;  %p2593_p10 = scmp.lt.s32.totalorder %s2591_s17, %s2585_s30 }
 0x9b2   : > { %s3212_s0 = scalar_lea.hbm %s3303_s25, %s2059_s20  ;;  %p2588_p3 = pneg %p2587_p2 }
 0x9b3   : > { %p2594_p11 = por %p2593_p10, %p2592_p4 }
 0x9b5   : > { %p2595_p8 = pnand %p2594_p11, %p2588_p3 }
 0xa6f   : > { %v1784_v44 = vpop.f32.mrb[6].mxu0 }
 0xa70   : > { %v2216_v45 = vadd.f32 %v1784_v44, %v1061_v43  ;;  %v2196_v46 = vpop.f32.mrb[7].mxu0 }
 0xa72   : > { %1789 = vst.msk [vmem:[%s541_s19] sm:$0xff] %vm569_vm1, %v2216_v45 }
 0xa73   : > { %2598 = shalt.err (!%p2595_p8)
}
 0xa74   : > { %s2599_s15 = scalar_lea.hbm %s3212_s0, 128  ;;  %s2603_s20 = scalar_lea.hbm %s3303_s25, 256 }
 0xa75   : > { %p2600_p5 = scmp.ne.s32.totalorder %s3212_s0, %s2599_s15  ;;  %p2604_p9 = scmp.lt.u32.totalorder %s3212_s0, %s3303_s25 }
 0xa76   : > { %p2605_p1 = scmp.lt.u32.totalorder %s2603_s20, %s2599_s15  ;;  %p2607_p0 = scmp.lt.u32.totalorder %s2599_s15, %s3212_s0 }
 0xa77   : > { %p2601_p7 = pnand %p2600_p5, %p3302_p12 }
 0xa78   : > { %p2606_p13 = por %p2605_p1, %p2604_p9 }
 0xa79   : > { %p2602_p6 = pneg %p2601_p7 }
 0xa7a   : > { %p2608_p2 = por %p2607_p0, %p2606_p13 }
 0xa7c   : > { %p2609_p3 = pnand %p2608_p2, %p2602_p6 }
 0xa7e   : > { %2612 = shalt.err (!%p2609_p3)
}
 0xa7f   : > { %2247 = dma.vmem_to_hbm [thread:$0]  (%p3302_p12), %s3214_s26, 128, %s3212_s0, %s1791_s27  }
 0xa80 PF: > { %s1837_s11 = sand.u32 1, %s2655_s21   ;;  %p3304_p4 = scmp.ne.s32.totalorder %s3289_s14, 0 }
 0xa81   : > { %p3305_p10 = scmp.ge.s32.totalorder %s2667_s24, 2  ;;  %s1838_s30 = scalar_lea.sflag [#allocation4], %s1837_s11 }
 0xa83   : > { %p2275_p11 = pnand %p3305_p10, %p3304_p4 }
 0xa85   : > { %2646 = dma.done.wait (!%p2275_p11), %s1838_s30, 128  }
 0xa86   : > { %2648 = vsyncadd (!%p2275_p11), %s1838_s30, 4294967168  ;;  %s1847_s16 = scalar_lea.sflag [#allocation16], %s1837_s11 }
 0xa87   : > { %2650 = dma.done.wait (!%p2275_p11), %s1847_s16, 512  }
 0xa88   : > { %2652 = vsyncadd (!%p2275_p11), %s1847_s16, 4294966784  ;;  %p32_p12 = scmp.ge.s32.totalorder %s2942_s13, 4   ;;  %s3306_s21 = smov %s2659_s22 }
 0xa89   : > { %s3307_s22 = smov %s2663_s23  ;;  %s3308_s23 = smov %s2953_s3 }
 0xa8a   : > { %s3309_s24 = smov %s2942_s13  ;;  %34 = sbr.rel (!%p32_p12) target bundleno = 17 (0x11), region = 159 }
 0xa91   :  { %1852 = vsyncpa [#allocation3], 1 }
 0xa92   :  { %1854 = vsyncpa [#allocation3 + $0x1], 1 }
 0xa93   :  { %1855 = vsyncpa [#allocation6], 1 }
 0xa94   :  { %1856 = vsyncpa [#allocation9], 1 }
 0xa95   :  { %1857 = vsyncpa [#allocation12], 1 }
 0xa96   :  { %1858 = vsyncpa [#allocation4], 1 }
 0xa97   :  { %1860 = vsyncpa [#allocation4 + $0x1], 1 }
 0xa98   :  { %1861 = vsyncpa [#allocation16], 1 }
 0xa99   :  { %1863 = vsyncpa [#allocation16 + $0x1], 1 }

</bundles_post_ra>
